<compile_context>
chip_gen: v6e
topology: v6e:2x2x1
jax: 0.10.0
libtpu: 0.0.40
codegen_flags: <defaults>
</compile_context>

<pallas_src>
import jax
import jax.numpy as jnp
from jax.experimental import pallas as pl
from jax.experimental.pallas import tpu as pltpu


def _round_up(x, m):
    return (x + m - 1) // m * m


def _disc_kernel(zx_ref, yoh_ref, w1_ref, b1_ref, w2t_ref, b2_ref, o_ref):
    # Blocks per grid step (one batch tile of tb rows):
    #   zx_ref : (tb, C*F)   one-hot-expanded features for the selected class
    #   yoh_ref: (tb, C)     one_hot(y)
    #   w1_ref : (C*F, H)    stacked per-class layer-1 weights (resident)
    #   b1_ref : (C, H)      per-class layer-1 bias            (resident)
    #   w2t_ref: (H, C)      layer-2 weights, transposed       (resident)
    #   b2_ref : (1, C)      layer-2 bias                      (resident)
    #   o_ref  : (tb, 1)
    # Layer 1 (selected class only): (tb, C*F) @ (C*F, H) on the MXU.
    pre = jnp.dot(zx_ref[...], w1_ref[...], preferred_element_type=jnp.float32)
    # b1[y] gather as a tiny one-hot matmul: (tb, C) @ (C, H).
    pre = pre + jnp.dot(yoh_ref[...], b1_ref[...],
                        preferred_element_type=jnp.float32)
    h = jnp.tanh(pre)                                                # (tb, H)
    # Layer 2 for all classes: (tb, H) @ (H, C) -> per-class scores.
    scores = jnp.dot(h, w2t_ref[...], preferred_element_type=jnp.float32)
    # Class-conditional pick (b2 folded in; one-hot rows sum to 1).
    sel = (scores + b2_ref[...]) * yoh_ref[...]                      # (tb, C)
    o_ref[...] = jnp.sum(sel, axis=-1, keepdims=True)                # (tb, 1)


def discriminators_2l_forward(Z, y, W1, b1, W2, b2):
    """Pallas TPU implementation of Discriminators_2l.forward.

    Z : [B, F] float32, y : [B] int32
    W1: [C, H, F], b1: [C, H], W2: [C, H], b2: [C]
    returns: [B] float32
    """
    f32 = jnp.float32
    B, F = Z.shape
    C, H, _ = W1.shape
    CF = C * F

    # Lane-dense weight layouts (wrapper-side, traced once under jit):
    #   W1_sel[c*F + f, h] = W1[c, h, f]   -> layer-1 matmul RHS (C*F, H)
    #   W2_t  [h, c]       = W2[c, h]      -> layer-2 matmul RHS (H, C)
    W1_sel = W1.astype(f32).transpose(0, 2, 1).reshape(CF, H)
    b1_mat = b1.astype(f32)                                          # (C, H)
    W2_t = W2.astype(f32).T                                          # (H, C)
    b2_row = b2.astype(f32).reshape(1, C)

    # Batch tiling: sublane-aligned tiles; whole (padded) batch per step when small.
    tb = 128 if B >= 128 else _round_up(B, 8)
    Bp = _round_up(B, tb)
    pad = Bp - B
    Zp = jnp.pad(Z.astype(f32), ((0, pad), (0, 0)))
    yp = jnp.pad(y.astype(jnp.int32), (0, pad))
    yoh = jax.nn.one_hot(yp, C, dtype=f32)                           # (Bp, C)
    # One-hot-expanded features: Zexp[b, c*F + f] = onehot[b, c] * Z[b, f].
    Zexp = (yoh[:, :, None] * Zp[:, None, :]).reshape(Bp, CF)        # (Bp, C*F)

    out = pl.pallas_call(
        _disc_kernel,
        out_shape=jax.ShapeDtypeStruct((Bp, 1), f32),
        grid=(Bp // tb,),
        in_specs=[
            pl.BlockSpec((tb, CF), lambda i: (i, 0)),    # Zexp tile
            pl.BlockSpec((tb, C), lambda i: (i, 0)),     # one_hot(y) tile
            pl.BlockSpec((CF, H), lambda i: (0, 0)),     # W1_sel (resident)
            pl.BlockSpec((C, H), lambda i: (0, 0)),      # b1     (resident)
            pl.BlockSpec((H, C), lambda i: (0, 0)),      # W2^T   (resident)
            pl.BlockSpec((1, C), lambda i: (0, 0)),      # b2     (resident)
        ],
        out_specs=pl.BlockSpec((tb, 1), lambda i: (i, 0)),
        compiler_params=pltpu.CompilerParams(
            dimension_semantics=("parallel",)),
    )(Zexp, yoh, W1_sel, b1_mat, W2_t, b2_row)
    return out[:B, 0]


def _reference(Z, y, W1, b1, W2, b2):
    w1 = W1[y]                                   # [B, H, F]
    b1g = b1[y]                                  # [B, H]
    w2 = W2[y]                                   # [B, H]
    b2g = b2[y]                                  # [B]
    op = jnp.tanh(jnp.sum(w1 * Z[:, None, :], axis=-1) + b1g)
    return jnp.sum(w2 * op, axis=-1) + b2g


if __name__ == "__main__":
    num_classes = 4
    feat_dim = 32
    hidden_dim = 512          # hardcoded in the PyTorch module
    batch = 8

    key = jax.random.PRNGKey(0)
    k_w1, k_w2, k_z, k_y = jax.random.split(key, 4)

    # Deterministic parameter init matching the module's __init__ shapes:
    #   W1 ~ randn(C, H, F), b1 = zeros(C, H), W2 ~ randn(C, H), b2 = zeros(C)
    W1 = jax.random.normal(k_w1, (num_classes, hidden_dim, feat_dim), jnp.float32)
    b1 = jnp.zeros((num_classes, hidden_dim), jnp.float32)
    W2 = jax.random.normal(k_w2, (num_classes, hidden_dim), jnp.float32)
    b2 = jnp.zeros((num_classes,), jnp.float32)

    Z = jax.random.normal(k_z, (batch, feat_dim), jnp.float32)
    y = jax.random.randint(k_y, (batch,), 0, num_classes, jnp.int32)

    out = discriminators_2l_forward(Z, y, W1, b1, W2, b2)
    out = jax.block_until_ready(out)

    ref = _reference(Z, y, W1, b1, W2, b2)
    assert out.shape == (batch,)
    assert jnp.allclose(out, ref, atol=1e-3, rtol=1e-3), (out, ref)

    print("KERNEL_OK")
</pallas_src>

<mosaic_0001>
module attributes {stable_mosaic.version = 11 : i64} {
  func.func @_disc_kernel(%arg0: i32, %arg1: memref<8x128xf32, #tpu.memory_space<vmem>>, %arg2: memref<8x4xf32, #tpu.memory_space<vmem>>, %arg3: memref<128x512xf32, #tpu.memory_space<vmem>>, %arg4: memref<4x512xf32, #tpu.memory_space<vmem>>, %arg5: memref<512x4xf32, #tpu.memory_space<vmem>>, %arg6: memref<1x4xf32, #tpu.memory_space<vmem>>, %arg7: memref<8x1xf32, #tpu.memory_space<vmem>>) attributes {dimension_semantics = [#tpu.dimension_semantics<parallel>], iteration_bounds = array<i64: 1>, scalar_prefetch = 0 : i64, scratch_operands = 0 : i64, tpu.core_type = #tpu.core_type<tc>, window_params = [{transform_indices = @transform_0, window_bounds = array<i64: 8, 128>}, {transform_indices = @transform_1, window_bounds = array<i64: 8, 4>}, {pipeline_mode = #tpu.pipeline_mode<synchronous>, transform_indices = @transform_2, window_bounds = array<i64: 128, 512>}, {pipeline_mode = #tpu.pipeline_mode<synchronous>, transform_indices = @transform_3, window_bounds = array<i64: 4, 512>}, {pipeline_mode = #tpu.pipeline_mode<synchronous>, transform_indices = @transform_4, window_bounds = array<i64: 512, 4>}, {pipeline_mode = #tpu.pipeline_mode<synchronous>, transform_indices = @transform_5, window_bounds = array<i64: 1, 4>}, {transform_indices = @transform_6, window_bounds = array<i64: 8, 1>}]} {
    %c0 = arith.constant 0 : index
    %c0_0 = arith.constant 0 : index
    %0 = vector.load %arg1[%c0, %c0_0] : memref<8x128xf32, #tpu.memory_space<vmem>>, vector<8x128xf32>
    %c0_1 = arith.constant 0 : index
    %c0_2 = arith.constant 0 : index
    %1 = vector.load %arg3[%c0_1, %c0_2] : memref<128x512xf32, #tpu.memory_space<vmem>>, vector<128x512xf32>
    %cst = arith.constant dense<0.000000e+00> : vector<8x512xf32>
    %2 = tpu.matmul %0, %1, %cst {dimension_numbers = #tpu.dot_dimension_numbers<[1], [0], [0], [1], [0, 0, 1, 1], [], []>} : vector<8x128xf32>, vector<128x512xf32>, vector<8x512xf32> -> vector<8x512xf32>
    %c0_3 = arith.constant 0 : index
    %c0_4 = arith.constant 0 : index
    %3 = vector.load %arg2[%c0_3, %c0_4] : memref<8x4xf32, #tpu.memory_space<vmem>>, vector<8x4xf32>
    %c0_5 = arith.constant 0 : index
    %c0_6 = arith.constant 0 : index
    %4 = vector.load %arg4[%c0_5, %c0_6] : memref<4x512xf32, #tpu.memory_space<vmem>>, vector<4x512xf32>
    %cst_7 = arith.constant dense<0.000000e+00> : vector<8x512xf32>
    %5 = tpu.matmul %3, %4, %cst_7 {dimension_numbers = #tpu.dot_dimension_numbers<[1], [0], [0], [1], [0, 0, 1, 1], [], []>} : vector<8x4xf32>, vector<4x512xf32>, vector<8x512xf32> -> vector<8x512xf32>
    %6 = arith.addf %2, %5 : vector<8x512xf32>
    %7 = math.tanh %6 : vector<8x512xf32>
    %c0_8 = arith.constant 0 : index
    %c0_9 = arith.constant 0 : index
    %8 = vector.load %arg5[%c0_8, %c0_9] : memref<512x4xf32, #tpu.memory_space<vmem>>, vector<512x4xf32>
    %cst_10 = arith.constant dense<0.000000e+00> : vector<8x4xf32>
    %9 = tpu.matmul %7, %8, %cst_10 {dimension_numbers = #tpu.dot_dimension_numbers<[1], [0], [0], [1], [0, 0, 1, 1], [], []>} : vector<8x512xf32>, vector<512x4xf32>, vector<8x4xf32> -> vector<8x4xf32>
    %c0_11 = arith.constant 0 : index
    %c0_12 = arith.constant 0 : index
    %10 = vector.load %arg6[%c0_11, %c0_12] : memref<1x4xf32, #tpu.memory_space<vmem>>, vector<1x4xf32>
    %11 = vector.broadcast %10 : vector<1x4xf32> to vector<8x4xf32>
    %12 = arith.addf %9, %11 : vector<8x4xf32>
    %c0_13 = arith.constant 0 : index
    %c0_14 = arith.constant 0 : index
    %13 = vector.load %arg2[%c0_13, %c0_14] : memref<8x4xf32, #tpu.memory_space<vmem>>, vector<8x4xf32>
    %14 = arith.mulf %12, %13 : vector<8x4xf32>
    %cst_15 = arith.constant dense<0.000000e+00> : vector<8xf32>
    %15 = vector.multi_reduction <add>, %14, %cst_15 [1] : vector<8x4xf32> to vector<8xf32>
    %16 = vector.shape_cast %15 : vector<8xf32> to vector<8x1xf32>
    %c0_16 = arith.constant 0 : index
    %c0_17 = arith.constant 0 : index
    %17 = vector.load %arg7[%c0_16, %c0_17] : memref<8x1xf32, #tpu.memory_space<vmem>>, vector<8x1xf32>
    tpu.vector_store %arg7[%c0_16, %c0_17], %16 {strides = array<i32>} : memref<8x1xf32, #tpu.memory_space<vmem>>, vector<8x1xf32>,
    return
  }
  func.func @transform_0(%arg0: i32) -> (i32, i32) {
    %c0_i32 = arith.constant 0 : i32
    %c0_i32_0 = arith.constant 0 : i32
    return %arg0, %c0_i32 : i32, i32
  }
  func.func @transform_1(%arg0: i32) -> (i32, i32) {
    %c0_i32 = arith.constant 0 : i32
    %c0_i32_0 = arith.constant 0 : i32
    return %arg0, %c0_i32 : i32, i32
  }
  func.func @transform_2(%arg0: i32) -> (i32, i32) {
    %c0_i32 = arith.constant 0 : i32
    %c0_i32_0 = arith.constant 0 : i32
    %c0_i32_1 = arith.constant 0 : i32
    return %c0_i32, %c0_i32_0 : i32, i32
  }
  func.func @transform_3(%arg0: i32) -> (i32, i32) {
    %c0_i32 = arith.constant 0 : i32
    %c0_i32_0 = arith.constant 0 : i32
    %c0_i32_1 = arith.constant 0 : i32
    return %c0_i32, %c0_i32_0 : i32, i32
  }
  func.func @transform_4(%arg0: i32) -> (i32, i32) {
    %c0_i32 = arith.constant 0 : i32
    %c0_i32_0 = arith.constant 0 : i32
    %c0_i32_1 = arith.constant 0 : i32
    return %c0_i32, %c0_i32_0 : i32, i32
  }
  func.func @transform_5(%arg0: i32) -> (i32, i32) {
    %c0_i32 = arith.constant 0 : i32
    %c0_i32_0 = arith.constant 0 : i32
    %c0_i32_1 = arith.constant 0 : i32
    return %c0_i32, %c0_i32_0 : i32, i32
  }
  func.func @transform_6(%arg0: i32) -> (i32, i32) {
    %c0_i32 = arith.constant 0 : i32
    %c0_i32_0 = arith.constant 0 : i32
    return %arg0, %c0_i32 : i32, i32
  }
}

</mosaic_0001>

<bundles_post_ra>
// kernel: tpu_custom_call.1
= control target key start
LH: loop header
LB: loop body
LE: loop exit
PB: predicated region body
PF: predicated region fallthrough
CT: control target
= control target key end

     0   :  { %11 = vsyncpa [#allocation3], 0  ;;  %s741_s21 = smov [#allocation2]   ;;  %s1192_s0 = inlined_call_operand.hbm [shape: f32[8,128], index: 0, kind: input, shape index: {}]   ;;  %s1193_s1 = inlined_call_operand.vmem [shape: f32[8,4], index: 1, kind: input, shape index: {}]   ;;  %s1194_s2 = inlined_call_operand.vmem [shape: f32[128,512], index: 2, kind: input, shape index: {}]   ;;  %s1195_s3 = inlined_call_operand.vmem [shape: f32[4,512], index: 3, kind: input, shape index: {}]   ;;  %s1196_s4 = inlined_call_operand.vmem [shape: f32[512,4], index: 4, kind: input, shape index: {}]   ;;  %s1197_s5 = inlined_call_operand.vmem [shape: f32[1,4], index: 5, kind: input, shape index: {}]   ;;  %s1198_s6 = inlined_call_operand.vmem [shape: f32[8,1], index: 6, kind: output, shape index: {}]  }
   0x1   :  { %s18_s22 = sshll.u32 %s741_s21, 4  ;;  %s19_s22 = int_to_ptr.vmem [resolvable:$true] %s18_s22 }
   0x2   :  { %s727_s23 = scalar_lea.vmem %s19_s22, 128  ;;  %p732_p1 = scmp.lt.s32.totalorder %s19_s22, %s19_s22 }
   0x3   :  { %p728_p0 = scmp.ne.s32.totalorder %s19_s22, %s727_s23  ;;  %p733_p2 = scmp.lt.s32.totalorder %s727_s23, %s727_s23 }
   0x5   :  { %p734_p3 = por %p733_p2, %p732_p1 }
   0x7   :  { %p735_p4 = pnand %p734_p3, %p728_p0 }
   0x9   :  { %738 = shalt.err (!%p735_p4)
}
   0xa   :  { %21 = dma.hbm_to_vmem [thread:$0]  %s1192_s0, 128, %s19_s22, [#allocation3]  }
   0xb   :  { %739 = dma.done.wait [#allocation3], 128  }
   0xc   :  { %740 = vsyncadd [#allocation3], 4294967168  ;;  %v742_v0 = vmov 0.0   ;;  %v101_v1 = vld [vmem:[%s1195_s3] sm:$0xff]  ;;  %vm111_vm0 = vcmask 1043456   ;;  %v102_v2 = vld [vmem:[%s1195_s3 + $0x8] sm:$0xff] }
   0xd   :  { %184 = vmatprep.mubr.f32.mxu0 %v742_v0  ;;  %255 = vmatprep.mubr.f32.mxu1 %v742_v0  ;;  %v105_v3 = vcombine.high %v101_v1, %v101_v1  ;;  %v106_v4 = vcombine.high %v102_v2, %v102_v2  ;;  %v792_v5 = vld [vmem:[%s1193_s1] sm:$0xff]  ;;  %vm107_vm1 = vcmask 31744   ;;  %v97_v6 = vld [vmem:[%s1194_s2 + $0x1e8] sm:$0xff]  ;;  %v99_v7 = vld [vmem:[%s1194_s2 + $0x1f8] sm:$0xff]  ;;  %vm623_vm2 = vcmask 7168  }
   0xe   :  { %v96_v8 = vld [vmem:[%s1194_s2 + $0x1e0] sm:$0xff]  ;;  %v98_v9 = vld [vmem:[%s1194_s2 + $0x1f0] sm:$0xff]  ;;  %v93_v10 = vld [vmem:[%s1194_s2 + $0x1c8] sm:$0xff] }
   0xf   :  { %630 = vmatprep.subr.msk.mxu0 %vm111_vm0, %v105_v3  ;;  %633 = vmatprep.subr.msk.mxu1 %vm111_vm0, %v106_v4  ;;  %v95_v11 = vld [vmem:[%s1194_s2 + $0x1d8] sm:$0xff]  ;;  %v92_v12 = vld [vmem:[%s1194_s2 + $0x1c0] sm:$0xff]  ;;  %v94_v13 = vld [vmem:[%s1194_s2 + $0x1d0] sm:$0xff] }
  0x10   :  { %631 = vmatpush1.msk.msra.mxu0 %vm111_vm0, %v101_v1  ;;  %634 = vmatpush1.msk.msra.mxu1 %vm111_vm0, %v102_v2  ;;  %v89_v14 = vld [vmem:[%s1194_s2 + $0x1a8] sm:$0xff]  ;;  %v91_v15 = vld [vmem:[%s1194_s2 + $0x1b8] sm:$0xff]  ;;  %v88_v16 = vld [vmem:[%s1194_s2 + $0x1a0] sm:$0xff] }
  0x11   :  { %632 = vmatmul.mubr.msk.f32.vlgmr.msra.gmra.mxu0 %vm107_vm1, %v792_v5  ;;  %262 = vmatprep.subr.mxu0 %v97_v6  ;;  %v90_v17 = vld [vmem:[%s1194_s2 + $0x1b0] sm:$0xff]  ;;  %v85_v18 = vld [vmem:[%s1194_s2 + $0x188] sm:$0xff]  ;;  %v87_v19 = vld [vmem:[%s1194_s2 + $0x198] sm:$0xff] }
  0x12   :  { %333 = vmatprep.subr.mxu1 %v99_v7  ;;  %635 = vmatmul.mubr.msk.f32.vlgmr.msra.gmra.mxu1 %vm107_vm1, %v792_v5  ;;  %v84_v20 = vld [vmem:[%s1194_s2 + $0x180] sm:$0xff]  ;;  %v86_v21 = vld [vmem:[%s1194_s2 + $0x190] sm:$0xff]  ;;  %v81_v22 = vld [vmem:[%s1194_s2 + $0x168] sm:$0xff] }
  0x13   :  { %263 = vmatpush1.msra.mxu0 %v96_v8  ;;  %334 = vmatpush1.msra.mxu1 %v98_v9  ;;  %v83_v23 = vld [vmem:[%s1194_s2 + $0x178] sm:$0xff]  ;;  %v80_v24 = vld [vmem:[%s1194_s2 + $0x160] sm:$0xff]  ;;  %v82_v25 = vld [vmem:[%s1194_s2 + $0x170] sm:$0xff] }
  0x14   :  { %264 = vmatprep.subr.mxu0 %v93_v10  ;;  %335 = vmatprep.subr.mxu1 %v95_v11  ;;  %v77_v26 = vld [vmem:[%s1194_s2 + $0x148] sm:$0xff]  ;;  %v79_v27 = vld [vmem:[%s1194_s2 + $0x158] sm:$0xff]  ;;  %v76_v28 = vld [vmem:[%s1194_s2 + $0x140] sm:$0xff] }
  0x15   :  { %265 = vmatpush1.msra.mxu0 %v92_v12  ;;  %336 = vmatpush1.msra.mxu1 %v94_v13  ;;  %v78_v29 = vld [vmem:[%s1194_s2 + $0x150] sm:$0xff]  ;;  %v73_v30 = vld [vmem:[%s1194_s2 + $0x128] sm:$0xff]  ;;  %v75_v31 = vld [vmem:[%s1194_s2 + $0x138] sm:$0xff] }
  0x16   :  { %266 = vmatprep.subr.mxu0 %v89_v14  ;;  %337 = vmatprep.subr.mxu1 %v91_v15  ;;  %v72_v32 = vld [vmem:[%s1194_s2 + $0x120] sm:$0xff]  ;;  %v74_v33 = vld [vmem:[%s1194_s2 + $0x130] sm:$0xff]  ;;  %v69_v34 = vld [vmem:[%s1194_s2 + $0x108] sm:$0xff] }
  0x17   :  { %267 = vmatpush1.msra.mxu0 %v88_v16  ;;  %338 = vmatpush1.msra.mxu1 %v90_v17  ;;  %v71_v35 = vld [vmem:[%s1194_s2 + $0x118] sm:$0xff]  ;;  %v68_v36 = vld [vmem:[%s1194_s2 + $0x100] sm:$0xff]  ;;  %v70_v37 = vld [vmem:[%s1194_s2 + $0x110] sm:$0xff] }
  0x18   :  { %268 = vmatprep.subr.mxu0 %v85_v18  ;;  %339 = vmatprep.subr.mxu1 %v87_v19  ;;  %v65_v38 = vld [vmem:[%s1194_s2 + $0xe8] sm:$0xff]  ;;  %v67_v39 = vld [vmem:[%s1194_s2 + $0xf8] sm:$0xff]  ;;  %v64_v40 = vld [vmem:[%s1194_s2 + $0xe0] sm:$0xff] }
  0x19   :  { %269 = vmatpush1.msra.mxu0 %v84_v20  ;;  %340 = vmatpush1.msra.mxu1 %v86_v21  ;;  %v66_v41 = vld [vmem:[%s1194_s2 + $0xf0] sm:$0xff]  ;;  %v61_v42 = vld [vmem:[%s1194_s2 + $0xc8] sm:$0xff]  ;;  %v63_v43 = vld [vmem:[%s1194_s2 + $0xd8] sm:$0xff] }
  0x1a   :  { %270 = vmatprep.subr.mxu0 %v81_v22  ;;  %341 = vmatprep.subr.mxu1 %v83_v23  ;;  %v60_v44 = vld [vmem:[%s1194_s2 + $0xc0] sm:$0xff]  ;;  %v62_v45 = vld [vmem:[%s1194_s2 + $0xd0] sm:$0xff]  ;;  %v57_v46 = vld [vmem:[%s1194_s2 + $0xa8] sm:$0xff] }
  0x1b   :  { %271 = vmatpush1.msra.mxu0 %v80_v24  ;;  %342 = vmatpush1.msra.mxu1 %v82_v25  ;;  %v59_v47 = vld [vmem:[%s1194_s2 + $0xb8] sm:$0xff]  ;;  %v56_v48 = vld [vmem:[%s1194_s2 + $0xa0] sm:$0xff]  ;;  %v58_v49 = vld [vmem:[%s1194_s2 + $0xb0] sm:$0xff] }
  0x1c   :  { %272 = vmatprep.subr.mxu0 %v77_v26  ;;  %343 = vmatprep.subr.mxu1 %v79_v27  ;;  %v53_v50 = vld [vmem:[%s1194_s2 + $0x88] sm:$0xff]  ;;  %v55_v51 = vld [vmem:[%s1194_s2 + $0x98] sm:$0xff]  ;;  %v52_v52 = vld [vmem:[%s1194_s2 + $0x80] sm:$0xff] }
  0x1d   :  { %273 = vmatpush1.msra.mxu0 %v76_v28  ;;  %344 = vmatpush1.msra.mxu1 %v78_v29  ;;  %v54_v53 = vld [vmem:[%s1194_s2 + $0x90] sm:$0xff]  ;;  %v49_v54 = vld [vmem:[%s1194_s2 + $0x68] sm:$0xff]  ;;  %v51_v55 = vld [vmem:[%s1194_s2 + $0x78] sm:$0xff] }
  0x1e   :  { %274 = vmatprep.subr.mxu0 %v73_v30  ;;  %345 = vmatprep.subr.mxu1 %v75_v31  ;;  %v48_v56 = vld [vmem:[%s1194_s2 + $0x60] sm:$0xff]  ;;  %v50_v57 = vld [vmem:[%s1194_s2 + $0x70] sm:$0xff]  ;;  %v45_v58 = vld [vmem:[%s1194_s2 + $0x48] sm:$0xff] }
  0x1f   :  { %275 = vmatpush1.msra.mxu0 %v72_v32  ;;  %346 = vmatpush1.msra.mxu1 %v74_v33  ;;  %v47_v59 = vld [vmem:[%s1194_s2 + $0x58] sm:$0xff]  ;;  %v44_v60 = vld [vmem:[%s1194_s2 + $0x40] sm:$0xff]  ;;  %v46_v61 = vld [vmem:[%s1194_s2 + $0x50] sm:$0xff] }
  0x20   :  { %276 = vmatprep.subr.mxu0 %v69_v34  ;;  %347 = vmatprep.subr.mxu1 %v71_v35  ;;  %v41_v62 = vld [vmem:[%s1194_s2 + $0x28] sm:$0xff]  ;;  %v43_v63 = vld [vmem:[%s1194_s2 + $0x38] sm:$0xff]  ;;  %v40_v1 = vld [vmem:[%s1194_s2 + $0x20] sm:$0xff] }
  0x21   :  { %277 = vmatpush1.msra.mxu0 %v68_v36  ;;  %348 = vmatpush1.msra.mxu1 %v70_v37  ;;  %v42_v2 = vld [vmem:[%s1194_s2 + $0x30] sm:$0xff]  ;;  %v37_v3 = vld [vmem:[%s1194_s2 + $0x8] sm:$0xff]  ;;  %v39_v4 = vld [vmem:[%s1194_s2 + $0x18] sm:$0xff] }
  0x22   :  { %278 = vmatprep.subr.mxu0 %v65_v38  ;;  %349 = vmatprep.subr.mxu1 %v67_v39  ;;  %v36_v6 = vld [vmem:[%s1194_s2] sm:$0xff]  ;;  %v38_v7 = vld [vmem:[%s1194_s2 + $0x10] sm:$0xff]  ;;  %v439_v9 = vld [vmem:[%s1196_s4 + $0xf8] sm:$0xff] }
  0x23   :  { %279 = vmatpush1.msra.mxu0 %v64_v40  ;;  %350 = vmatpush1.msra.mxu1 %v66_v41  ;;  %v35_v8 = vld [vmem:[#allocation2] sm:$0xff]  ;;  %v471_v10 = vld [vmem:[%s1196_s4 + $0x1f8] sm:$0xff]  ;;  %v438_v12 = vld [vmem:[%s1196_s4 + $0xf0] sm:$0xff] }
  0x24   :  { %280 = vmatprep.subr.mxu0 %v61_v42  ;;  %351 = vmatprep.subr.mxu1 %v63_v43  ;;  %v423_v11 = vld [vmem:[%s1196_s4 + $0x78] sm:$0xff]  ;;  %v470_v13 = vld [vmem:[%s1196_s4 + $0x1f0] sm:$0xff]  ;;  %v437_v16 = vld [vmem:[%s1196_s4 + $0xe8] sm:$0xff] }
  0x25   :  { %281 = vmatpush1.msra.mxu0 %v60_v44  ;;  %352 = vmatpush1.msra.mxu1 %v62_v45  ;;  %v422_v14 = vld [vmem:[%s1196_s4 + $0x70] sm:$0xff]  ;;  %v469_v17 = vld [vmem:[%s1196_s4 + $0x1e8] sm:$0xff]  ;;  %v436_v20 = vld [vmem:[%s1196_s4 + $0xe0] sm:$0xff] }
  0x26   :  { %282 = vmatprep.subr.mxu0 %v57_v46  ;;  %353 = vmatprep.subr.mxu1 %v59_v47  ;;  %v454_v15 = vld [vmem:[%s1196_s4 + $0x170] sm:$0xff]  ;;  %v421_v18 = vld [vmem:[%s1196_s4 + $0x68] sm:$0xff]  ;;  %v468_v21 = vld [vmem:[%s1196_s4 + $0x1e0] sm:$0xff] }
  0x27   :  { %283 = vmatpush1.msra.mxu0 %v56_v48  ;;  %354 = vmatpush1.msra.mxu1 %v58_v49  ;;  %v453_v19 = vld [vmem:[%s1196_s4 + $0x168] sm:$0xff]  ;;  %v420_v22 = vld [vmem:[%s1196_s4 + $0x60] sm:$0xff]  ;;  %v435_v24 = vld [vmem:[%s1196_s4 + $0xd8] sm:$0xff] }
  0x28   :  { %284 = vmatprep.subr.mxu0 %v53_v50  ;;  %355 = vmatprep.subr.mxu1 %v55_v51  ;;  %v452_v23 = vld [vmem:[%s1196_s4 + $0x160] sm:$0xff]  ;;  %v467_v25 = vld [vmem:[%s1196_s4 + $0x1d8] sm:$0xff]  ;;  %v434_v28 = vld [vmem:[%s1196_s4 + $0xd0] sm:$0xff] }
  0x29   :  { %285 = vmatpush1.msra.mxu0 %v52_v52  ;;  %356 = vmatpush1.msra.mxu1 %v54_v53  ;;  %v419_v26 = vld [vmem:[%s1196_s4 + $0x58] sm:$0xff]  ;;  %v466_v29 = vld [vmem:[%s1196_s4 + $0x1d0] sm:$0xff]  ;;  %v433_v32 = vld [vmem:[%s1196_s4 + $0xc8] sm:$0xff] }
  0x2a   :  { %286 = vmatprep.subr.mxu0 %v49_v54  ;;  %357 = vmatprep.subr.mxu1 %v51_v55  ;;  %v451_v27 = vld [vmem:[%s1196_s4 + $0x158] sm:$0xff]  ;;  %v418_v30 = vld [vmem:[%s1196_s4 + $0x50] sm:$0xff]  ;;  %v465_v33 = vld [vmem:[%s1196_s4 + $0x1c8] sm:$0xff] }
  0x2b   :  { %287 = vmatpush1.msra.mxu0 %v48_v56  ;;  %358 = vmatpush1.msra.mxu1 %v50_v57  ;;  %v450_v31 = vld [vmem:[%s1196_s4 + $0x150] sm:$0xff]  ;;  %v417_v34 = vld [vmem:[%s1196_s4 + $0x48] sm:$0xff]  ;;  %v432_v36 = vld [vmem:[%s1196_s4 + $0xc0] sm:$0xff] }
  0x2c   :  { %288 = vmatprep.subr.mxu0 %v45_v58  ;;  %359 = vmatprep.subr.mxu1 %v47_v59  ;;  %v449_v35 = vld [vmem:[%s1196_s4 + $0x148] sm:$0xff]  ;;  %v464_v37 = vld [vmem:[%s1196_s4 + $0x1c0] sm:$0xff]  ;;  %v431_v40 = vld [vmem:[%s1196_s4 + $0xb8] sm:$0xff] }
  0x2d   :  { %289 = vmatpush1.msra.mxu0 %v44_v60  ;;  %360 = vmatpush1.msra.mxu1 %v46_v61  ;;  %v416_v38 = vld [vmem:[%s1196_s4 + $0x40] sm:$0xff]  ;;  %v463_v41 = vld [vmem:[%s1196_s4 + $0x1b8] sm:$0xff]  ;;  %v430_v44 = vld [vmem:[%s1196_s4 + $0xb0] sm:$0xff] }
  0x2e   :  { %290 = vmatprep.subr.mxu0 %v41_v62  ;;  %361 = vmatprep.subr.mxu1 %v43_v63  ;;  %v448_v39 = vld [vmem:[%s1196_s4 + $0x140] sm:$0xff]  ;;  %v415_v42 = vld [vmem:[%s1196_s4 + $0x38] sm:$0xff]  ;;  %v462_v45 = vld [vmem:[%s1196_s4 + $0x1b0] sm:$0xff] }
  0x2f   :  { %291 = vmatpush1.msra.mxu0 %v40_v1  ;;  %362 = vmatpush1.msra.mxu1 %v42_v2  ;;  %v447_v43 = vld [vmem:[%s1196_s4 + $0x138] sm:$0xff]  ;;  %v414_v46 = vld [vmem:[%s1196_s4 + $0x30] sm:$0xff]  ;;  %v429_v48 = vld [vmem:[%s1196_s4 + $0xa8] sm:$0xff] }
  0x30   :  { %292 = vmatprep.subr.mxu0 %v37_v3  ;;  %363 = vmatprep.subr.mxu1 %v39_v4  ;;  %v446_v47 = vld [vmem:[%s1196_s4 + $0x130] sm:$0xff]  ;;  %v461_v49 = vld [vmem:[%s1196_s4 + $0x1a8] sm:$0xff]  ;;  %v428_v52 = vld [vmem:[%s1196_s4 + $0xa0] sm:$0xff] }
  0x31   :  { %293 = vmatpush1.msra.mxu0 %v36_v6  ;;  %326 = vmatprep.mubr.f32.mxu0 %v742_v0  ;;  %v413_v50 = vld [vmem:[%s1196_s4 + $0x28] sm:$0xff]  ;;  %v460_v53 = vld [vmem:[%s1196_s4 + $0x1a0] sm:$0xff]  ;;  %v427_v56 = vld [vmem:[%s1196_s4 + $0x98] sm:$0xff] }
  0x32   :  { %364 = vmatpush1.msra.mxu1 %v38_v7  ;;  %397 = vmatprep.mubr.f32.mxu1 %v742_v0  ;;  %v455_v0 = vld [vmem:[%s1196_s4 + $0x178] sm:$0xff]  ;;  %v445_v51 = vld [vmem:[%s1196_s4 + $0x128] sm:$0xff]  ;;  %v412_v54 = vld [vmem:[%s1196_s4 + $0x20] sm:$0xff] }
  0x33   :  { %327 = vmatmul.mubr.f32.vlgmr.msra.gmra.mxu0 %v35_v8  ;;  %398 = vmatmul.mubr.f32.vlgmr.msra.gmra.mxu1 %v35_v8  ;;  %v444_v55 = vld [vmem:[%s1196_s4 + $0x120] sm:$0xff]  ;;  %v459_v57 = vld [vmem:[%s1196_s4 + $0x198] sm:$0xff]  ;;  %v426_v60 = vld [vmem:[%s1196_s4 + $0x90] sm:$0xff] }
  0x34   :  { %637 = vmatprep.subr.mxu0 %v439_v9  ;;  %672 = vmatprep.subr.mxu1 %v471_v10  ;;  %v411_v58 = vld [vmem:[%s1196_s4 + $0x18] sm:$0xff]  ;;  %v458_v61 = vld [vmem:[%s1196_s4 + $0x190] sm:$0xff]  ;;  %v425_v1 = vld [vmem:[%s1196_s4 + $0x88] sm:$0xff] }
  0x35   :  { %638 = vmatpush3.msra.mxu0 %v423_v11  ;;  %673 = vmatpush3.msra.mxu1 %v455_v0  ;;  %v443_v59 = vld [vmem:[%s1196_s4 + $0x118] sm:$0xff]  ;;  %v410_v62 = vld [vmem:[%s1196_s4 + $0x10] sm:$0xff]  ;;  %v457_v2 = vld [vmem:[%s1196_s4 + $0x188] sm:$0xff] }
  0x36   :  { %639 = vmatprep.subr.mxu0 %v438_v12  ;;  %674 = vmatprep.subr.mxu1 %v470_v13  ;;  %v442_v63 = vld [vmem:[%s1196_s4 + $0x110] sm:$0xff]  ;;  %v409_v3 = vld [vmem:[%s1196_s4 + $0x8] sm:$0xff]  ;;  %v424_v6 = vld [vmem:[%s1196_s4 + $0x80] sm:$0xff] }
  0x37   :  { %640 = vmatpush3.msra.mxu0 %v422_v14  ;;  %675 = vmatpush3.msra.mxu1 %v454_v15  ;;  %v441_v4 = vld [vmem:[%s1196_s4 + $0x108] sm:$0xff]  ;;  %v456_v7 = vld [vmem:[%s1196_s4 + $0x180] sm:$0xff] }
  0x38   :  { %641 = vmatprep.subr.mxu0 %v437_v16  ;;  %676 = vmatprep.subr.mxu1 %v469_v17  ;;  %v408_v8 = vld [vmem:[%s1196_s4] sm:$0xff] }
  0x39   :  { %642 = vmatpush3.msra.mxu0 %v421_v18  ;;  %677 = vmatpush3.msra.mxu1 %v453_v19  ;;  %v440_v9 = vld [vmem:[%s1196_s4 + $0x100] sm:$0xff] }
  0x3a   :  { %643 = vmatprep.subr.mxu0 %v436_v20  ;;  %678 = vmatprep.subr.mxu1 %v468_v21 }
  0x3b   :  { %644 = vmatpush3.msra.mxu0 %v420_v22  ;;  %679 = vmatpush3.msra.mxu1 %v452_v23 }
  0x3c   :  { %645 = vmatprep.subr.mxu0 %v435_v24  ;;  %680 = vmatprep.subr.mxu1 %v467_v25 }
  0x3d   :  { %646 = vmatpush3.msra.mxu0 %v419_v26  ;;  %681 = vmatpush3.msra.mxu1 %v451_v27  ;;  %v636_v27 = vld [vmem:[%s1197_s5] ss:$0 sm:$0xff] }
  0x3e   :  { %647 = vmatprep.subr.mxu0 %v434_v28  ;;  %682 = vmatprep.subr.mxu1 %v466_v29 }
  0x3f   :  { %648 = vmatpush3.msra.mxu0 %v418_v30  ;;  %683 = vmatpush3.msra.mxu1 %v450_v31 }
  0x40   :  { %649 = vmatprep.subr.mxu0 %v433_v32  ;;  %684 = vmatprep.subr.mxu1 %v465_v33 }
  0x41   :  { %650 = vmatpush3.msra.mxu0 %v417_v34  ;;  %685 = vmatpush3.msra.mxu1 %v449_v35 }
  0x42   :  { %651 = vmatprep.subr.mxu0 %v432_v36  ;;  %686 = vmatprep.subr.mxu1 %v464_v37 }
  0x43   :  { %652 = vmatpush3.msra.mxu0 %v416_v38  ;;  %687 = vmatpush3.msra.mxu1 %v448_v39 }
  0x44   :  { %653 = vmatprep.subr.mxu0 %v431_v40  ;;  %688 = vmatprep.subr.mxu1 %v463_v41 }
  0x45   :  { %654 = vmatpush3.msra.mxu0 %v415_v42  ;;  %689 = vmatpush3.msra.mxu1 %v447_v43 }
  0x46   :  { %655 = vmatprep.subr.mxu0 %v430_v44  ;;  %690 = vmatprep.subr.mxu1 %v462_v45 }
  0x47   :  { %656 = vmatpush3.msra.mxu0 %v414_v46  ;;  %691 = vmatpush3.msra.mxu1 %v446_v47 }
  0x48   :  { %657 = vmatprep.subr.mxu0 %v429_v48  ;;  %692 = vmatprep.subr.mxu1 %v461_v49 }
  0x49   :  { %658 = vmatpush3.msra.mxu0 %v413_v50  ;;  %693 = vmatpush3.msra.mxu1 %v445_v51 }
  0x4a   :  { %659 = vmatprep.subr.mxu0 %v428_v52  ;;  %694 = vmatprep.subr.mxu1 %v460_v53 }
  0x4b   :  { %660 = vmatpush3.msra.mxu0 %v412_v54  ;;  %695 = vmatpush3.msra.mxu1 %v444_v55 }
  0x4c   :  { %661 = vmatprep.subr.mxu0 %v427_v56  ;;  %696 = vmatprep.subr.mxu1 %v459_v57 }
  0x4d   :  { %662 = vmatpush3.msra.mxu0 %v411_v58  ;;  %697 = vmatpush3.msra.mxu1 %v443_v59 }
  0x4e   :  { %663 = vmatprep.subr.mxu0 %v426_v60  ;;  %698 = vmatprep.subr.mxu1 %v458_v61 }
  0x4f   :  { %664 = vmatpush3.msra.mxu0 %v410_v62  ;;  %699 = vmatpush3.msra.mxu1 %v442_v63 }
  0x50   :  { %665 = vmatprep.subr.mxu0 %v425_v1  ;;  %700 = vmatprep.subr.mxu1 %v457_v2 }
  0x51   :  { %666 = vmatpush3.msra.mxu0 %v409_v3  ;;  %701 = vmatpush3.msra.mxu1 %v441_v4 }
  0x52   :  { %667 = vmatprep.subr.mxu0 %v424_v6  ;;  %702 = vmatprep.subr.mxu1 %v456_v7 }
  0x53   :  { %668 = vmatpush3.msra.mxu0 %v408_v8  ;;  %703 = vmatpush3.msra.mxu1 %v440_v9 }
  0xd1   :  { %v186_v10 = vpop.f32.mrf.mxu0 }
  0xd2   :  { %v257_v11 = vpop.f32.mrf.mxu1 }
  0xd3   :  { %v188_v0 = vpop.f32.mrf.mxu0 }
  0xd4   :  { %v259_v12 = vpop.f32.mrf.mxu1 }
  0xf3   :  { %v328_v13 = vpop.f32.mrf.mxu0  ;;  %v399_v14 = vpop.f32.mrf.mxu1 }
  0xf4   :  { %v329_v15 = vadd.f32 %v328_v13, %v186_v10  ;;  %v400_v18 = vadd.f32 %v399_v14, %v257_v11 }
  0xf5   :  { %v330_v16 = vpop.f32.mrf.mxu0  ;;  %v401_v17 = vpop.f32.mrf.mxu1 }
  0xf6   :  { %v331_v19 = vadd.f32 %v330_v16, %v188_v0  ;;  %v402_v20 = vadd.f32 %v401_v17, %v259_v12  ;;  %711 = vtanh.f32 %v329_v15 }
  0xf8   :  { %713 = vtanh.f32 %v331_v19 }
  0xf9   :  { %715 = vtanh.f32 %v402_v20 }
  0xfa   :  { %717 = vtanh.f32 %v400_v18 }
 0x103   :  { %v712_v21 = vpop.eup %711 }
 0x105   :  { %v714_v22 = vpop.eup %713 }
 0x106   :  { %v716_v23 = vpop.eup %715  ;;  %543 = vmatprep.mubr.f32.mxu0 %v714_v22 }
 0x107   :  { %v718_v24 = vpop.eup %717  ;;  %613 = vmatprep.mubr.f32.mxu1 %v716_v23  ;;  %544 = vmatmul.mubr.f32.vlgmr.msra.gmra.mxu0 %v712_v21 }
 0x108   :  { %614 = vmatmul.mubr.f32.vlgmr.msra.gmra.mxu1 %v718_v24 }
 0x1c7   :  { %v669_v25 = vpop.f32.mrf.mxu0 }
 0x1c8   :  { %v704_v26 = vpop.f32.mrf.mxu1 }
 0x1c9   :  { %v670_v28 = vpop.f32.mrf.mxu0 }
 0x1ca   :  { %v671_v29 = vadd.f32 %v670_v28, %v669_v25  ;;  %v705_v30 = vpop.f32.mrf.mxu1 }
 0x1cb   :  { %v706_v32 = vadd.f32 %v705_v30, %v704_v26 }
 0x1cc   :  { %v546_v31 = vadd.f32 %v671_v29, %v636_v27 }
 0x1ce   :  { %v616_v33 = vadd.f32 %v706_v32, %v546_v31 }
 0x1d0   :  { %v619_v34 = vmul.f32 %v616_v33, %v792_v5 }
 0x1d2   :  { %v620_v35 = vsel %vm107_vm1, %v619_v34, 0.0 }
 0x1d3   :  { %621 = vadd.xlane.f32.xlu0 %v620_v35 }
 0x25c   :  { %v622_v36 = vpop.xlane.xlu0 %621 }
 0x25d   :  { %624 = vst.msk [vmem:[%s1198_s6] sm:$0xff] %vm623_vm2, %v622_v36 }
 0x25e   :  { %629 = vsyncpa [#allocation3], 1 }

</bundles_post_ra>
